<compile_context>
chip_gen: v7x
topology: tpu7x:2x2x1
jax: 0.10.0
libtpu: 0.0.40
codegen_flags: <defaults>
</compile_context>

<pallas_src>
import jax
import jax.numpy as jnp
from jax.experimental import pallas as pl
from jax.experimental.pallas import tpu as pltpu


def _round_up(x, m):
    return (x + m - 1) // m * m


def _cdiv(a, b):
    return (a + b - 1) // b


def _choose_batch_tile(B, tm_max=1024):
    """Batch tile: as large as possible (amortize per-step overhead), a
    multiple of 16 (bf16 sublane packing), and capped at ceil(B/2) so the
    1-D 'parallel' grid has >= 2 steps and v7x's 2nd TensorCore gets work."""
    tm = min(tm_max, _round_up(B, 16))
    if B > 16:
        tm = min(tm, _round_up(_cdiv(B, 2), 16))
    return tm


def two_layer_fc_kernel(x_ref, w1_ref, b1_ref, w2_ref, b2_ref, o_ref):
    # In-kernel VPU cast f32 -> bf16 (hides under the tile DMA; avoids a
    # separate wrapper-side cast pass over the dominant input).
    x = x_ref[...].astype(jnp.bfloat16)
    # Layer 1: (tm, K)bf16 @ (K, Hp)bf16 -> f32 accumulate on the MXU.
    h = jnp.dot(x, w1_ref[...], preferred_element_type=jnp.float32)
    h = h + b1_ref[...]                      # (1, Hp) broadcast; 128-lane vregs
    # Sigmoid strictly in f32: exp -> EUP, approx reciprocal -> EUP slot.
    # (~1e-3-class rel. error; acceptable here, use approx=False for parity.)
    h = pl.reciprocal(1.0 + jnp.exp(-h), approx=True)
    # Layer 2: activations back to bf16 for the MXU, f32 accumulate.
    o = jnp.dot(h.astype(w2_ref.dtype), w2_ref[...],
                preferred_element_type=jnp.float32)
    o_ref[...] = (o + b2_ref[...]).astype(o_ref.dtype)   # lane-dense (tm, Np) store


def prepare_two_layer_fc_params(w1, b1, w2, b2):
    """One-time parameter prep (pad hidden/output to 128 lanes, cast weights
    to bf16).  Call once and reuse across forward calls -- keeps pad/convert
    HBM round-trips out of the per-call path."""
    K, H = w1.shape
    N = w2.shape[1]
    Hp = _round_up(H, 128)
    Np = _round_up(N, 128)
    w1p = jnp.pad(w1, ((0, 0), (0, Hp - H))).astype(jnp.bfloat16)
    b1p = jnp.pad(b1.reshape(1, H), ((0, 0), (0, Hp - H))).astype(jnp.float32)
    # Padded hidden rows of w2 are zero, so sigmoid(0)=0.5 in the padded hidden
    # lanes contributes nothing to the output.
    w2p = jnp.pad(w2, ((0, Hp - H), (0, Np - N))).astype(jnp.bfloat16)
    b2p = jnp.pad(b2.reshape(1, N), ((0, 0), (0, Np - N))).astype(jnp.float32)
    return {"w1": w1p, "b1": b1p, "w2": w2p, "b2": b2p,
            "dims": (K, H, N, Hp, Np)}


def two_layer_fc_prepared(x, params, *, tm_max=1024, out_dtype=jnp.float32):
    """Forward pass with pre-prepared params.  x: (B, K) f32 -> (B, N)."""
    K, H, N, Hp, Np = params["dims"]
    B = x.shape[0]

    tm = _choose_batch_tile(B, tm_max)
    Bp = _round_up(B, tm)
    # Batch padding only; x stays f32 (cast happens in-kernel), K unpadded.
    xp = jnp.pad(x, ((0, Bp - B), (0, 0)))

    out_itemsize = jnp.dtype(out_dtype).itemsize
    cost = pl.CostEstimate(
        flops=2 * Bp * (K * Hp + Hp * Np),
        transcendentals=Bp * Hp,                      # exp in the sigmoid
        bytes_accessed=(Bp * K * 4                    # x (f32 read)
                        + Bp * Np * out_itemsize      # output write
                        + (K * Hp + Hp * Np) * 2      # bf16 weights
                        + (Hp + Np) * 4),             # f32 biases
    )

    out = pl.pallas_call(
        two_layer_fc_kernel,
        out_shape=jax.ShapeDtypeStruct((Bp, Np), out_dtype),
        grid_spec=pltpu.PrefetchScalarGridSpec(
            num_scalar_prefetch=0,
            grid=(Bp // tm,),
            in_specs=[
                pl.BlockSpec((tm, K), lambda i: (i, 0)),    # batch-tiled x stream
                pl.BlockSpec((K, Hp), lambda i: (0, 0)),    # weights stay resident
                pl.BlockSpec((1, Hp), lambda i: (0, 0)),
                pl.BlockSpec((Hp, Np), lambda i: (0, 0)),
                pl.BlockSpec((1, Np), lambda i: (0, 0)),
            ],
            out_specs=pl.BlockSpec((tm, Np), lambda i: (i, 0)),  # lane-dense out
        ),
        compiler_params=pltpu.CompilerParams(
            dimension_semantics=("parallel",),  # shard batch tiles across TCs (v7x)
        ),
        cost_estimate=cost,
    )(xp, params["w1"], params["b1"], params["w2"], params["b2"])
    # TODO(synk): when fused into a larger jitted graph, return the padded slab
    # (and/or bf16) to the consumer instead of slicing here.
    return out[:B, :N]


def two_layer_fc(x, w1, b1, w2, b2, **kwargs):
    """One-shot convenience path (prep + forward)."""
    return two_layer_fc_prepared(x, prepare_two_layer_fc_params(w1, b1, w2, b2),
                                 **kwargs)


if __name__ == "__main__":
    input_size, hidden_size, output_size = 784, 50, 10
    batch = 2

    key = jax.random.PRNGKey(0)
    kx, k1, k2, k3, k4 = jax.random.split(key, 5)

    # Deterministic parameter init (uniform, like nn.Linear's default scale).
    bound1 = 1.0 / (input_size ** 0.5)
    bound2 = 1.0 / (hidden_size ** 0.5)
    w1 = jax.random.uniform(k1, (input_size, hidden_size), jnp.float32, -bound1, bound1)
    b1 = jax.random.uniform(k2, (hidden_size,), jnp.float32, -bound1, bound1)
    w2 = jax.random.uniform(k3, (hidden_size, output_size), jnp.float32, -bound2, bound2)
    b2 = jax.random.uniform(k4, (output_size,), jnp.float32, -bound2, bound2)

    x = jax.random.normal(kx, (batch, input_size), jnp.float32)

    # Hoisted, one-time parameter prep; reused for every forward call.
    params = prepare_two_layer_fc_params(w1, b1, w2, b2)
    out = jax.block_until_ready(two_layer_fc_prepared(x, params))

    # Reference in plain JAX with the same bf16-in / f32-accumulate recipe
    # (exact sigmoid; kernel's approx reciprocal is ~1e-3 rel. error).
    h_ref = jnp.dot(x.astype(jnp.bfloat16), w1.astype(jnp.bfloat16),
                    preferred_element_type=jnp.float32) + b1[None, :]
    h_ref = jax.nn.sigmoid(h_ref)
    ref = jnp.dot(h_ref.astype(jnp.bfloat16), w2.astype(jnp.bfloat16),
                  preferred_element_type=jnp.float32) + b2[None, :]

    assert out.shape == (batch, output_size)
    assert out.dtype == jnp.float32
    assert jnp.allclose(out, ref, atol=2e-2, rtol=2e-2), (
        float(jnp.max(jnp.abs(out - ref))))
    print("KERNEL_OK")
</pallas_src>

<mosaic_0001>
module attributes {stable_mosaic.version = 11 : i64} {
  func.func @two_layer_fc_kernel(%arg0: i32, %arg1: memref<16x784xf32, #tpu.memory_space<vmem>>, %arg2: memref<784x128xbf16, #tpu.memory_space<vmem>>, %arg3: memref<1x128xf32, #tpu.memory_space<vmem>>, %arg4: memref<128x128xbf16, #tpu.memory_space<vmem>>, %arg5: memref<1x128xf32, #tpu.memory_space<vmem>>, %arg6: memref<16x128xf32, #tpu.memory_space<vmem>>) attributes {dimension_semantics = [#tpu.dimension_semantics<parallel>], iteration_bounds = array<i64: 1>, scalar_prefetch = 0 : i64, scratch_operands = 0 : i64, tpu.core_type = #tpu.core_type<tc>, window_params = [{transform_indices = @transform_0, window_bounds = array<i64: 16, 784>}, {pipeline_mode = #tpu.pipeline_mode<synchronous>, transform_indices = @transform_1, window_bounds = array<i64: 784, 128>}, {pipeline_mode = #tpu.pipeline_mode<synchronous>, transform_indices = @transform_2, window_bounds = array<i64: 1, 128>}, {pipeline_mode = #tpu.pipeline_mode<synchronous>, transform_indices = @transform_3, window_bounds = array<i64: 128, 128>}, {pipeline_mode = #tpu.pipeline_mode<synchronous>, transform_indices = @transform_4, window_bounds = array<i64: 1, 128>}, {transform_indices = @transform_5, window_bounds = array<i64: 16, 128>}]} {
    %c0 = arith.constant 0 : index
    %c0_0 = arith.constant 0 : index
    %0 = vector.load %arg1[%c0, %c0_0] : memref<16x784xf32, #tpu.memory_space<vmem>>, vector<16x784xf32>
    %1 = arith.truncf %0 : vector<16x784xf32> to vector<16x784xbf16>
    %c0_1 = arith.constant 0 : index
    %c0_2 = arith.constant 0 : index
    %2 = vector.load %arg2[%c0_1, %c0_2] : memref<784x128xbf16, #tpu.memory_space<vmem>>, vector<784x128xbf16>
    %cst = arith.constant dense<0.000000e+00> : vector<16x128xf32>
    %3 = tpu.matmul %1, %2, %cst {dimension_numbers = #tpu.dot_dimension_numbers<[1], [0], [0], [1], [0, 0, 1, 1], [], []>} : vector<16x784xbf16>, vector<784x128xbf16>, vector<16x128xf32> -> vector<16x128xf32>
    %c0_3 = arith.constant 0 : index
    %c0_4 = arith.constant 0 : index
    %4 = vector.load %arg3[%c0_3, %c0_4] : memref<1x128xf32, #tpu.memory_space<vmem>>, vector<1x128xf32>
    %5 = vector.broadcast %4 : vector<1x128xf32> to vector<16x128xf32>
    %6 = arith.addf %3, %5 : vector<16x128xf32>
    %cst_5 = arith.constant 0.000000e+00 : f32
    %7 = vector.broadcast %cst_5 : f32 to vector<16x128xf32>
    %8 = arith.subf %7, %6 : vector<16x128xf32>
    %9 = math.exp %8 : vector<16x128xf32>
    %cst_6 = arith.constant 1.000000e+00 : f32
    %10 = vector.broadcast %cst_6 : f32 to vector<16x128xf32>
    %11 = arith.addf %10, %9 : vector<16x128xf32>
    %12 = tpu.reciprocal %11 {approx = true} : vector<16x128xf32> -> vector<16x128xf32>
    %13 = arith.truncf %12 : vector<16x128xf32> to vector<16x128xbf16>
    %c0_7 = arith.constant 0 : index
    %c0_8 = arith.constant 0 : index
    %14 = vector.load %arg4[%c0_7, %c0_8] : memref<128x128xbf16, #tpu.memory_space<vmem>>, vector<128x128xbf16>
    %cst_9 = arith.constant dense<0.000000e+00> : vector<16x128xf32>
    %15 = tpu.matmul %13, %14, %cst_9 {dimension_numbers = #tpu.dot_dimension_numbers<[1], [0], [0], [1], [0, 0, 1, 1], [], []>} : vector<16x128xbf16>, vector<128x128xbf16>, vector<16x128xf32> -> vector<16x128xf32>
    %c0_10 = arith.constant 0 : index
    %c0_11 = arith.constant 0 : index
    %16 = vector.load %arg5[%c0_10, %c0_11] : memref<1x128xf32, #tpu.memory_space<vmem>>, vector<1x128xf32>
    %17 = vector.broadcast %16 : vector<1x128xf32> to vector<16x128xf32>
    %18 = arith.addf %15, %17 : vector<16x128xf32>
    %c0_12 = arith.constant 0 : index
    %c0_13 = arith.constant 0 : index
    %19 = vector.load %arg6[%c0_12, %c0_13] : memref<16x128xf32, #tpu.memory_space<vmem>>, vector<16x128xf32>
    tpu.vector_store %arg6[%c0_12, %c0_13], %18 {strides = array<i32>} : memref<16x128xf32, #tpu.memory_space<vmem>>, vector<16x128xf32>,
    return
  }
  func.func @transform_0(%arg0: i32) -> (i32, i32) {
    %c0_i32 = arith.constant 0 : i32
    %c0_i32_0 = arith.constant 0 : i32
    return %arg0, %c0_i32 : i32, i32
  }
  func.func @transform_1(%arg0: i32) -> (i32, i32) {
    %c0_i32 = arith.constant 0 : i32
    %c0_i32_0 = arith.constant 0 : i32
    %c0_i32_1 = arith.constant 0 : i32
    return %c0_i32, %c0_i32_0 : i32, i32
  }
  func.func @transform_2(%arg0: i32) -> (i32, i32) {
    %c0_i32 = arith.constant 0 : i32
    %c0_i32_0 = arith.constant 0 : i32
    %c0_i32_1 = arith.constant 0 : i32
    return %c0_i32, %c0_i32_0 : i32, i32
  }
  func.func @transform_3(%arg0: i32) -> (i32, i32) {
    %c0_i32 = arith.constant 0 : i32
    %c0_i32_0 = arith.constant 0 : i32
    %c0_i32_1 = arith.constant 0 : i32
    return %c0_i32, %c0_i32_0 : i32, i32
  }
  func.func @transform_4(%arg0: i32) -> (i32, i32) {
    %c0_i32 = arith.constant 0 : i32
    %c0_i32_0 = arith.constant 0 : i32
    %c0_i32_1 = arith.constant 0 : i32
    return %c0_i32, %c0_i32_0 : i32, i32
  }
  func.func @transform_5(%arg0: i32) -> (i32, i32) {
    %c0_i32 = arith.constant 0 : i32
    %c0_i32_0 = arith.constant 0 : i32
    return %arg0, %c0_i32 : i32, i32
  }
}

</mosaic_0001>

<bundles_post_ra>
// kernel: tpu_custom_call.1
= control target key start
LH: loop header
LB: loop body
LE: loop exit
PB: predicated region body
PF: predicated region fallthrough
CT: control target
= control target key end

     0   :  { %10 = vsyncpa [#allocation3], 0  ;;  %s1243_s0 = inlined_call_operand.hbm [shape: f32[16,784], index: 0, kind: input, shape index: {}]   ;;  %s1244_s1 = inlined_call_operand.hbm [shape: bf16[784,128], index: 1, kind: input, shape index: {}]   ;;  %s1245_s2 = inlined_call_operand.vmem [shape: f32[1,128], index: 2, kind: input, shape index: {}]   ;;  %s1246_s3 = inlined_call_operand.hbm [shape: bf16[128,128], index: 3, kind: input, shape index: {}]   ;;  %s1247_s4 = inlined_call_operand.vmem [shape: f32[1,128], index: 4, kind: input, shape index: {}]   ;;  %s1248_s5 = inlined_call_operand.hbm [shape: f32[16,128], index: 5, kind: output, shape index: {}]  }
   0x1   :  { %11 = vsyncpa [#allocation6], 0 }
   0x2   :  { %12 = vsyncpa [#allocation4], 0  ;;  %s1128_s18 = smov [#allocation5]   ;;  %s1034_s22 = scalar_lea.hbm %s1244_s1, 6272 }
   0x3   :  { %s30_s19 = sshll.u32 %s1128_s18, 4  ;;  %p1035_p0 = scmp.ne.s32.totalorder %s1244_s1, %s1034_s22  ;;  %s31_s19 = int_to_ptr.vmem [resolvable:$true] %s30_s19 }
   0x4   :  { %p1038_p1 = scmp.lt.u32.totalorder %s1034_s22, %s1244_s1 }
   0x6   :  { %p1040_p2 = pnand %p1038_p1, %p1035_p0 }
   0x8   :  { %1043 = shalt.err (!%p1040_p2)
}
   0x9   :  { %s1044_s27 = scalar_lea.vmem %s31_s19, 6272  ;;  %p1049_p4 = scmp.lt.s32.totalorder %s31_s19, %s31_s19 }
   0xa   :  { %p1045_p3 = scmp.ne.s32.totalorder %s31_s19, %s1044_s27  ;;  %p1050_p5 = scmp.lt.s32.totalorder %s1044_s27, %s1044_s27 }
   0xc   :  { %p1051_p6 = por %p1050_p5, %p1049_p4 }
   0xe   :  { %p1052_p7 = pnand %p1051_p6, %p1045_p3 }
  0x10   :  { %1055 = shalt.err (!%p1052_p7)
}
  0x11   :  { %s1129_s28 = smov 64   ;;  %s1130_s29 = smov 4  }
  0x12   :  { %36 = dma.hbm_to_vmem [thread:$0]  %s1244_s1, 6272, %s31_s19, [#allocation6], %s1129_s28, %s1129_s28, %s1130_s29  }
  0x13   :  { %s1131_s7 = smov [#allocation2]   ;;  %s1056_s11 = scalar_lea.hbm %s1243_s0, 1792 }
  0x14   :  { %s18_s8 = sshll.u32 %s1131_s7, 4  ;;  %p1057_p8 = scmp.ne.s32.totalorder %s1243_s0, %s1056_s11  ;;  %s19_s8 = int_to_ptr.vmem [resolvable:$true] %s18_s8 }
  0x15   :  { %p1060_p9 = scmp.lt.u32.totalorder %s1056_s11, %s1243_s0 }
  0x17   :  { %p1062_p10 = pnand %p1060_p9, %p1057_p8 }
  0x19   :  { %1065 = shalt.err (!%p1062_p10)
}
  0x1a   :  { %s1066_s16 = scalar_lea.vmem %s19_s8, 1792  ;;  %p1071_p12 = scmp.lt.s32.totalorder %s19_s8, %s19_s8 }
  0x1b   :  { %p1067_p11 = scmp.ne.s32.totalorder %s19_s8, %s1066_s16  ;;  %p1072_p13 = scmp.lt.s32.totalorder %s1066_s16, %s1066_s16 }
  0x1d   :  { %p1073_p0 = por %p1072_p13, %p1071_p12 }
  0x1f   :  { %p1074_p1 = pnand %p1073_p0, %p1067_p11 }
  0x21   :  { %1077 = shalt.err (!%p1074_p1)
}
  0x22   :  { %s1132_s1 = smov 896   ;;  %s1133_s17 = smov 56  }
  0x23   :  { %24 = dma.hbm_to_vmem [thread:$0]  %s1243_s0, 1792, %s19_s8, [#allocation3], %s1132_s1, %s1132_s1, %s1133_s17  }
  0x24   :  { %s1134_s20 = smov [#allocation7]   ;;  %s1078_s24 = scalar_lea.hbm %s1246_s3, 1024 }
  0x25   :  { %s44_s21 = sshll.u32 %s1134_s20, 4  ;;  %p1079_p2 = scmp.ne.s32.totalorder %s1246_s3, %s1078_s24  ;;  %s45_s21 = int_to_ptr.vmem [resolvable:$true] %s44_s21 }
  0x26   :  { %p1082_p3 = scmp.lt.u32.totalorder %s1078_s24, %s1246_s3 }
  0x28   :  { %p1084_p4 = pnand %p1082_p3, %p1079_p2 }
  0x2a   :  { %1087 = shalt.err (!%p1084_p4)
}
  0x2b   :  { %s1088_s6 = scalar_lea.vmem %s45_s21, 1024  ;;  %p1093_p6 = scmp.lt.s32.totalorder %s45_s21, %s45_s21 }
  0x2c   :  { %p1089_p5 = scmp.ne.s32.totalorder %s45_s21, %s1088_s6  ;;  %p1094_p7 = scmp.lt.s32.totalorder %s1088_s6, %s1088_s6 }
  0x2e   :  { %p1095_p8 = por %p1094_p7, %p1093_p6 }
  0x30   :  { %p1096_p9 = pnand %p1095_p8, %p1089_p5 }
  0x32   :  { %1099 = shalt.err (!%p1096_p9)
}
  0x33   :  { %50 = dma.hbm_to_vmem [thread:$0]  %s1246_s3, 1024, %s45_s21, [#allocation6], %s1129_s28, %s1129_s28, %s1130_s29  }
  0x34   :  { %1122 = dma.done.wait [#allocation3], 1792  }
  0x35   :  { %1123 = vsyncadd [#allocation3], 4294965504 }
  0x36   :  { %1124 = dma.done.wait [#allocation6], 7296  }
  0x37   :  { %1125 = vsyncadd [#allocation6], 4294960000  ;;  %v969_v0 = vld [vmem:[#allocation5 + $0x40] sm:$0xff]   ;;  %v973_v4 = vld [vmem:[#allocation5 + $0x48] sm:$0xff]   ;;  %v1135_v43 = vmov 0.0   ;;  %vm1136_vm0 = vmmov 0  }
  0x38   :  { %v970_v1 = vld [vmem:[#allocation5] sm:$0xff]   ;;  %854 = vmatprep.subr.bf16.mxu0 %v969_v0  ;;  %v974_v5 = vld [vmem:[#allocation5 + $0x8] sm:$0xff]   ;;  %v977_v8 = vld [vmem:[#allocation5 + $0x50] sm:$0xff]   ;;  %vm483_vm1 = vcmask 130048   ;;  %s1137_s8 = smov [#allocation8]  }
  0x39   :  { %v971_v2 = vld [vmem:[#allocation5 + $0xc0] sm:$0xff]   ;;  %855 = vmatpush3.bf16.msra.mxu0 %v970_v1  ;;  %v975_v6 = vld [vmem:[#allocation5 + $0xc8] sm:$0xff]   ;;  %v978_v9 = vld [vmem:[#allocation5 + $0x10] sm:$0xff]   ;;  %s781_s9 = sshll.u32 %s1137_s8, 4  ;;  %s782_s9 = int_to_ptr.vmem [resolvable:$true] %s781_s9 }
  0x3a   :  { %v972_v3 = vld [vmem:[#allocation5 + $0x80] sm:$0xff]   ;;  %876 = vmatprep.subr.bf16.mxu1 %v971_v2  ;;  %856 = vmatprep.subr.bf16.mxu0 %v973_v4  ;;  %v976_v7 = vld [vmem:[#allocation5 + $0x88] sm:$0xff]   ;;  %v979_v10 = vld [vmem:[#allocation5 + $0xd0] sm:$0xff]   ;;  %s1100_s10 = scalar_lea.vmem %s782_s9, 256  ;;  %p1105_p11 = scmp.lt.s32.totalorder %s782_s9, %s782_s9 }
  0x3b   :  { %877 = vmatpush3.bf16.msra.mxu1 %v972_v3  ;;  %v980_v11 = vld [vmem:[#allocation5 + $0x90] sm:$0xff]   ;;  %v981_v12 = vld [vmem:[#allocation5 + $0x58] sm:$0xff]   ;;  %v985_v16 = vld [vmem:[#allocation5 + $0x60] sm:$0xff]   ;;  %p1101_p10 = scmp.ne.s32.totalorder %s782_s9, %s1100_s10  ;;  %p1106_p12 = scmp.lt.s32.totalorder %s1100_s10, %s1100_s10 }
  0x3c   :  { %878 = vmatprep.subr.bf16.mxu1 %v975_v6  ;;  %v982_v13 = vld [vmem:[#allocation5 + $0x18] sm:$0xff]   ;;  %v986_v17 = vld [vmem:[#allocation5 + $0x20] sm:$0xff]   ;;  %v989_v20 = vld [vmem:[#allocation5 + $0x68] sm:$0xff]  }
  0x3d   :  { %857 = vmatpush3.bf16.msra.mxu0 %v974_v5  ;;  %v983_v14 = vld [vmem:[#allocation5 + $0xd8] sm:$0xff]   ;;  %v987_v18 = vld [vmem:[#allocation5 + $0xe0] sm:$0xff]   ;;  %v990_v21 = vld [vmem:[#allocation5 + $0x28] sm:$0xff]   ;;  %p1107_p13 = por %p1106_p12, %p1105_p11 }
  0x3e   :  { %858 = vmatprep.subr.bf16.mxu0 %v977_v8  ;;  %v984_v15 = vld [vmem:[#allocation5 + $0x98] sm:$0xff]   ;;  %v988_v19 = vld [vmem:[#allocation5 + $0xa0] sm:$0xff]   ;;  %v991_v22 = vld [vmem:[#allocation5 + $0xe8] sm:$0xff]  }
  0x3f   :  { %879 = vmatpush3.bf16.msra.mxu1 %v976_v7  ;;  %v992_v23 = vld [vmem:[#allocation5 + $0xa8] sm:$0xff]   ;;  %v993_v24 = vld [vmem:[#allocation5 + $0x70] sm:$0xff]   ;;  %v997_v28 = vld [vmem:[#allocation5 + $0x78] sm:$0xff]   ;;  %p1108_p0 = pnand %p1107_p13, %p1101_p10 }
  0x40   :  { %880 = vmatprep.subr.bf16.mxu1 %v979_v10  ;;  %v994_v25 = vld [vmem:[#allocation5 + $0x30] sm:$0xff]   ;;  %v998_v29 = vld [vmem:[#allocation5 + $0x38] sm:$0xff]   ;;  %v70_v36 = vld [vmem:[#allocation2 + $0x38] sm:$0xff] }
  0x41   :  { %859 = vmatpush3.bf16.msra.mxu0 %v978_v9  ;;  %v995_v26 = vld [vmem:[#allocation5 + $0xf0] sm:$0xff]   ;;  %v999_v30 = vld [vmem:[#allocation5 + $0xf8] sm:$0xff]   ;;  %v1001_v38 = vld [vmem:[#allocation5 + $0x140] sm:$0xff]  }
  0x42   :  { %860 = vmatprep.subr.bf16.mxu0 %v981_v12  ;;  %v996_v27 = vld [vmem:[#allocation5 + $0xb0] sm:$0xff]   ;;  %v64_v31 = vld [vmem:[#allocation2 + $0x8] sm:$0xff]  ;;  %v66_v39 = vld [vmem:[#allocation2 + $0x18] sm:$0xff] }
  0x43   :  { %881 = vmatpush3.bf16.msra.mxu1 %v980_v11  ;;  %v71_v32 = vld [vmem:[#allocation2 + $0x40] sm:$0xff]  ;;  %v1000_v34 = vld [vmem:[#allocation5 + $0xb8] sm:$0xff]   ;;  %v73_v40 = vld [vmem:[#allocation2 + $0x50] sm:$0xff] }
  0x44   :  { %882 = vmatprep.subr.bf16.mxu1 %v983_v14  ;;  %v78_v33 = vpack.c.bf16 %v71_v32, %v64_v31  ;;  %v63_v35 = vld [vmem:[#allocation2] sm:$0xff]  ;;  %v80_v41 = vpack.c.bf16 %v73_v40, %v66_v39  ;;  %v1002_v42 = vld [vmem:[#allocation5 + $0x100] sm:$0xff]   ;;  %v72_v45 = vld [vmem:[#allocation2 + $0x48] sm:$0xff] }
  0x45   :  { %861 = vmatpush3.bf16.msra.mxu0 %v982_v13  ;;  %v77_v37 = vpack.c.bf16 %v70_v36, %v63_v35  ;;  %v65_v44 = vld [vmem:[#allocation2 + $0x10] sm:$0xff]  ;;  %v1003_v47 = vld [vmem:[#allocation5 + $0x148] sm:$0xff]   ;;  %v1005_v49 = vld [vmem:[#allocation5 + $0x150] sm:$0xff]  }
  0x46   :  { %862 = vmatprep.subr.bf16.mxu0 %v985_v16  ;;  %519 = vmatprep.mubr.bf16.mxu0 %v78_v33  ;;  %v79_v46 = vpack.c.bf16 %v72_v45, %v65_v44  ;;  %v1004_v48 = vld [vmem:[#allocation5 + $0x108] sm:$0xff]   ;;  %v1006_v50 = vld [vmem:[#allocation5 + $0x110] sm:$0xff]   ;;  %v1007_v51 = vld [vmem:[#allocation5 + $0x158] sm:$0xff]  }
  0x47   :  { %883 = vmatpush3.bf16.msra.mxu1 %v984_v15  ;;  %560 = vmatprep.mubr.bf16.mxu1 %v80_v41  ;;  %v1008_v52 = vld [vmem:[#allocation5 + $0x118] sm:$0xff]   ;;  %v1009_v53 = vld [vmem:[#allocation5 + $0x160] sm:$0xff]   ;;  %v1011_v55 = vld [vmem:[#allocation5 + $0x168] sm:$0xff]  }
  0x48   :  { %884 = vmatprep.subr.bf16.mxu1 %v987_v18  ;;  %v1010_v54 = vld [vmem:[#allocation5 + $0x120] sm:$0xff]   ;;  %v68_v57 = vld [vmem:[#allocation2 + $0x28] sm:$0xff]  ;;  %v1012_v58 = vld [vmem:[#allocation5 + $0x128] sm:$0xff]  }
  0x49   :  { %863 = vmatpush3.bf16.msra.mxu0 %v986_v17  ;;  %v1017_v56 = vld [vmem:[#allocation5 + $0x180] sm:$0xff]   ;;  %v1013_v59 = vld [vmem:[#allocation5 + $0x170] sm:$0xff]   ;;  %v76_v63 = vld [vmem:[#allocation2 + $0x68] sm:$0xff] }
  0x4a   :  { %864 = vmatprep.subr.bf16.mxu0 %v989_v20  ;;  %v75_v60 = vld [vmem:[#allocation2 + $0x60] sm:$0xff]  ;;  %v69_v62 = vld [vmem:[#allocation2 + $0x30] sm:$0xff]  ;;  %v1015_v2 = vld [vmem:[#allocation5 + $0x178] sm:$0xff]  }
  0x4b   :  { %885 = vmatpush3.bf16.msra.mxu1 %v988_v19  ;;  %v82_v61 = vpack.c.bf16 %v75_v60, %v68_v57  ;;  %v83_v0 = vpack.c.bf16 %v76_v63, %v69_v62  ;;  %v1014_v1 = vld [vmem:[#allocation5 + $0x130] sm:$0xff]   ;;  %v1016_v3 = vld [vmem:[#allocation5 + $0x138] sm:$0xff]   ;;  %v74_v5 = vld [vmem:[#allocation2 + $0x58] sm:$0xff] }
  0x4c   :  { %886 = vmatprep.subr.bf16.mxu1 %v991_v22  ;;  %v67_v4 = vld [vmem:[#allocation2 + $0x20] sm:$0xff]  ;;  %v1018_v7 = vld [vmem:[#allocation7] sm:$0xff]   ;;  %v1020_v9 = vld [vmem:[#allocation7 + $0x10] sm:$0xff]  }
  0x4d   :  { %865 = vmatpush3.bf16.msra.mxu0 %v990_v21  ;;  %v81_v6 = vpack.c.bf16 %v74_v5, %v67_v4  ;;  %v1019_v8 = vld [vmem:[#allocation7 + $0x8] sm:$0xff]   ;;  %v1021_v10 = vld [vmem:[#allocation7 + $0x18] sm:$0xff]   ;;  %v1022_v11 = vld [vmem:[#allocation7 + $0x20] sm:$0xff]  }
  0x4e   :  { %866 = vmatprep.subr.bf16.mxu0 %v993_v24  ;;  %v1023_v12 = vld [vmem:[#allocation7 + $0x28] sm:$0xff]   ;;  %v1024_v13 = vld [vmem:[#allocation7 + $0x30] sm:$0xff]   ;;  %v1025_v14 = vld [vmem:[#allocation7 + $0x38] sm:$0xff]  }
  0x4f   :  { %887 = vmatpush3.bf16.msra.mxu1 %v992_v23  ;;  %v794_v16 = vld [vmem:[%s1245_s2] ss:$0 sm:$0xff] }
  0x50   :  { %888 = vmatprep.subr.bf16.mxu1 %v995_v26  ;;  %v845_v57 = vld [vmem:[%s1247_s4] ss:$0 sm:$0xff] }
  0x51   :  { %867 = vmatpush3.bf16.msra.mxu0 %v994_v25 }
  0x52   :  { %868 = vmatprep.subr.bf16.mxu0 %v997_v28 }
  0x53   :  { %889 = vmatpush3.bf16.msra.mxu1 %v996_v27 }
  0x54   :  { %890 = vmatprep.subr.bf16.mxu1 %v999_v30 }
  0x55   :  { %869 = vmatpush3.bf16.msra.mxu0 %v998_v29 }
  0x56   :  { %898 = vmatprep.subr.bf16.mxu0 %v1001_v38 }
  0x57   :  { %891 = vmatpush3.bf16.msra.mxu1 %v1000_v34 }
  0x58   :  { %931 = vmatprep.subr.bf16.mxu1 %v1135_v43  ;;  %520 = vmatmul.mubr.bf16.vlgmr.msra.gmra.mrb[0].mxu0 %v77_v37 }
  0x59   :  { %899 = vmatpush3.bf16.msra.mxu0 %v1002_v42  ;;  %601 = vmatprep.mubr.bf16.mxu0 %v82_v61 }
  0x5a   :  { %561 = vmatmul.mubr.bf16.vlgmr.msra.gmra.mrb[0].mxu1 %v79_v46  ;;  %900 = vmatprep.subr.bf16.mxu0 %v1003_v47 }
  0x5b   :  { %933 = vmatprep.mubr.msk.bf16.mxu1 %vm1136_vm0, %v1135_v43  ;;  %932 = vmatpush3.bf16.msra.mxu1 %v1017_v56 }
  0x5c   :  { %937 = vmatprep.subr.bf16.mxu1 %v1135_v43 }
  0x5d   :  { %901 = vmatpush3.bf16.msra.mxu0 %v1004_v48 }
  0x5e   :  { %902 = vmatprep.subr.bf16.mxu0 %v1005_v49 }
  0x61   :  { %903 = vmatpush3.bf16.msra.mxu0 %v1006_v50 }
  0x62   :  { %904 = vmatprep.subr.bf16.mxu0 %v1007_v51  ;;  %934 = vmatmul.mubr.msk.bf16.vlgmr.msra.gmra.mrb[4].mxu1 %vm483_vm1, %v83_v0 }
  0x63   :  { %953 = vmatprep.mubr.msk.bf16.mxu1 %vm1136_vm0, %v1135_v43  ;;  %938 = vmatpush3.bf16.msra.mxu1 %v1018_v7 }
  0x64   :  { %939 = vmatprep.subr.bf16.mxu1 %v1135_v43 }
  0x65   :  { %905 = vmatpush3.bf16.msra.mxu0 %v1008_v52 }
  0x66   :  { %906 = vmatprep.subr.bf16.mxu0 %v1009_v53 }
  0x67   :  { %940 = vmatpush3.bf16.msra.mxu1 %v1019_v8 }
  0x68   :  { %941 = vmatprep.subr.bf16.mxu1 %v1135_v43 }
  0x69   :  { %907 = vmatpush3.bf16.msra.mxu0 %v1010_v54 }
  0x6a   :  { %908 = vmatprep.subr.bf16.mxu0 %v1011_v55 }
  0x6b   :  { %942 = vmatpush3.bf16.msra.mxu1 %v1020_v9 }
  0x6c   :  { %943 = vmatprep.subr.bf16.mxu1 %v1135_v43 }
  0x6d   :  { %909 = vmatpush3.bf16.msra.mxu0 %v1012_v58 }
  0x6e   :  { %910 = vmatprep.subr.bf16.mxu0 %v1013_v59 }
  0x6f   :  { %944 = vmatpush3.bf16.msra.mxu1 %v1021_v10 }
  0x70   :  { %945 = vmatprep.subr.bf16.mxu1 %v1135_v43 }
  0x71   :  { %911 = vmatpush3.bf16.msra.mxu0 %v1014_v1 }
  0x72   :  { %912 = vmatprep.subr.bf16.mxu0 %v1015_v2 }
  0x73   :  { %946 = vmatpush3.bf16.msra.mxu1 %v1022_v11 }
  0x74   :  { %947 = vmatprep.subr.bf16.mxu1 %v1135_v43 }
  0x75   :  { %913 = vmatpush3.bf16.msra.mxu0 %v1016_v3 }
  0x77   :  { %948 = vmatpush3.bf16.msra.mxu1 %v1023_v12 }
  0x78   :  { %602 = vmatmul.mubr.bf16.vlgmr.msra.gmra.mrb[4].mxu0 %v81_v6  ;;  %949 = vmatprep.subr.bf16.mxu1 %v1135_v43 }
  0x7b   :  { %950 = vmatpush3.bf16.msra.mxu1 %v1024_v13 }
  0x7c   :  { %951 = vmatprep.subr.bf16.mxu1 %v1135_v43 }
  0x7f   :  { %952 = vmatpush3.bf16.msra.mxu1 %v1025_v14 }
 0x12b   :  { %v870_v15 = vpop.f32.mrb[0].mxu0 }
 0x12c   :  { %v871_v17 = vpop.f32.mrb[1].mxu0 }
 0x12d   :  { %v872_v18 = vadd.f32 %v871_v17, %v870_v15  ;;  %v873_v19 = vpop.f32.mrb[2].mxu0  ;;  %v892_v20 = vpop.f32.mrb[0].mxu1 }
 0x12e   :  { %v874_v21 = vpop.f32.mrb[3].mxu0  ;;  %v893_v24 = vpop.f32.mrb[1].mxu1 }
 0x12f   :  { %v522_v22 = vadd.f32 %v872_v18, %v794_v16  ;;  %v875_v23 = vadd.f32 %v874_v21, %v873_v19  ;;  %v894_v25 = vadd.f32 %v893_v24, %v892_v20  ;;  %v895_v26 = vpop.f32.mrb[2].mxu1 }
 0x130   :  { %v896_v28 = vpop.f32.mrb[3].mxu1 }
 0x131   :  { %v525_v27 = vadd.f32 %v875_v23, %v794_v16  ;;  %v563_v29 = vadd.f32 %v894_v25, %v522_v22  ;;  %v897_v30 = vadd.f32 %v896_v28, %v895_v26 }
 0x133   :  { %v566_v31 = vadd.f32 %v897_v30, %v525_v27 }
 0x135   :  { %v644_v32 = vpop.f32.mrb[4].mxu1 }
 0x136   :  { %v935_v33 = vpop.f32.mrb[5].mxu1 }
 0x137   :  { %v647_v34 = vpop.f32.mrb[6].mxu1 }
 0x138   :  { %v936_v35 = vpop.f32.mrb[7].mxu1 }
 0x14b   :  { %v914_v36 = vpop.f32.mrb[4].mxu0 }
 0x14c   :  { %v915_v37 = vpop.f32.mrb[5].mxu0 }
 0x14d   :  { %v916_v38 = vadd.f32 %v915_v37, %v914_v36  ;;  %v917_v39 = vpop.f32.mrb[6].mxu0 }
 0x14e   :  { %v918_v40 = vpop.f32.mrb[7].mxu0 }
 0x14f   :  { %v604_v41 = vadd.f32 %v916_v38, %v563_v29  ;;  %v919_v42 = vadd.f32 %v918_v40, %v917_v39 }
 0x151   :  { %v645_v43 = vadd.f32 %v644_v32, %v604_v41  ;;  %v607_v44 = vadd.f32 %v919_v42, %v566_v31 }
 0x153   :  { %v651_v45 = vsub.f32 0.0, %v645_v43  ;;  %v648_v46 = vadd.f32 %v647_v34, %v607_v44 }
 0x155   :  { %v653_v47 = vmul.f32 1.442695, %v651_v45  ;;  %v652_v48 = vsub.f32 0.0, %v648_v46 }
 0x157   :  { %1026 = vpow2.f32 %v653_v47  ;;  %v655_v49 = vmul.f32 1.442695, %v652_v48 }
 0x159   :  { %1028 = vpow2.f32 %v655_v49 }
 0x161   :  { %v1027_v50 = vpop.eup %1026 }
 0x162   :  { %v657_v51 = vadd.f32 1.0, %v1027_v50 }
 0x163   :  { %v1029_v52 = vpop.eup %1028 }
 0x164   :  { %v658_v53 = vadd.f32 1.0, %v1029_v52  ;;  %1030 = vrcp.f32 %v657_v51 }
 0x166   :  { %1032 = vrcp.f32 %v658_v53 }
 0x16e   :  { %v1031_v54 = vpop.eup %1030 }
 0x170   :  { %v1033_v55 = vpop.eup %1032 }
 0x171   :  { %v661_v56 = vpack.c.bf16 %v1033_v55, %v1031_v54 }
 0x173   :  { %954 = vmatmul.mubr.bf16.vlgmr.msra.gmra.mrb[8].mxu1 %v661_v56 }
 0x246   :  { %v767_v58 = vpop.f32.mrb[8].mxu1 }
 0x247   :  { %v768_v59 = vadd.f32 %v845_v57, %v767_v58  ;;  %v955_v60 = vpop.f32.mrb[9].mxu1 }
 0x248   :  { %v770_v61 = vpop.f32.mrb[10].mxu1 }
 0x249   :  { %774 = vst [vmem:[#allocation8] sm:$0xff] %v768_v59  ;;  %v771_v62 = vadd.f32 %v845_v57, %v770_v61  ;;  %v956_v63 = vpop.f32.mrb[11].mxu1 }
 0x24b   :  { %775 = vst [vmem:[#allocation8 + $0x8] sm:$0xff] %v771_v62 }
 0x24c   :  { %1111 = shalt.err (!%p1108_p0)
}
 0x24d   :  { %s1112_s12 = scalar_lea.hbm %s1248_s5, 256 }
 0x24e   :  { %p1113_p1 = scmp.ne.s32.totalorder %s1248_s5, %s1112_s12  ;;  %p1116_p2 = scmp.lt.u32.totalorder %s1112_s12, %s1248_s5 }
 0x250   :  { %p1118_p3 = pnand %p1116_p2, %p1113_p1 }
 0x252   :  { %1121 = shalt.err (!%p1118_p3)
}
 0x253   :  { %s1138_s1 = smov 128   ;;  %s1139_s17 = smov 8  }
 0x254   :  { %787 = dma.vmem_to_hbm [thread:$0]  %s782_s9, 256, %s1248_s5, [#allocation4], %s1138_s1, %s1138_s1, %s1139_s17  }
 0x255   :  { %1126 = dma.done.wait [#allocation4], 256  }
 0x256   :  { %1127 = vsyncadd [#allocation4], 4294967040 }
 0x257   :  { %791 = vsyncpa [#allocation3], 1 }
 0x258   :  { %792 = vsyncpa [#allocation6], 1 }
 0x259   :  { %793 = vsyncpa [#allocation4], 1 }

</bundles_post_ra>
